<compile_context>
chip_gen: v5e
topology: v5e:2x2
jax: 0.10.0
libtpu: 0.0.40
codegen_flags: <defaults>
</compile_context>

<pallas_src>
import functools

import jax
import jax.numpy as jnp
from jax.experimental import pallas as pl
from jax.experimental.pallas import tpu as pltpu


def _round_up(x, m):
    return ((x + m - 1) // m) * m


def _largest_divisor_tile(dim, prefs):
    """Largest tile in `prefs` that divides `dim` (dim is 128-aligned)."""
    for t in prefs:
        if dim % t == 0:
            return t
    return dim


def _choose_m_tile(m, pref=512):
    """Return (tm, Mp): tile over rows and padded row count."""
    mp = _round_up(m, 8)
    if mp <= pref:
        return mp, mp
    return pref, _round_up(m, pref)


# ----------------------------------------------------------------------------
# Pallas kernels
# ----------------------------------------------------------------------------
def _matmul_act_kernel(a_ref, b_ref, o_ref, acc_ref, *, activation):
    """One (tm,tn,tk) tile of (M,K)@(K,N); f32 accumulator; fused activation."""
    @pl.when(pl.program_id(2) == 0)
    def _():
        acc_ref[...] = jnp.zeros_like(acc_ref)

    acc_ref[...] += jnp.dot(
        a_ref[...], b_ref[...], preferred_element_type=jnp.float32
    )

    @pl.when(pl.program_id(2) == pl.num_programs(2) - 1)
    def _():
        y = acc_ref[...]
        if activation == "leaky_relu":
            y = jnp.where(y >= 0.0, y, 0.2 * y)
        o_ref[...] = y.astype(o_ref.dtype)


def _matmul_dual_sigmoid_kernel(a_ref, b_ref, raw_ref, sig_ref, acc_ref):
    """Last conv layer: emit raw conv5 and sigmoid(conv5) from one epilogue."""
    @pl.when(pl.program_id(2) == 0)
    def _():
        acc_ref[...] = jnp.zeros_like(acc_ref)

    acc_ref[...] += jnp.dot(
        a_ref[...], b_ref[...], preferred_element_type=jnp.float32
    )

    @pl.when(pl.program_id(2) == pl.num_programs(2) - 1)
    def _():
        y = acc_ref[...]
        raw_ref[...] = y.astype(raw_ref.dtype)
        sig_ref[...] = (1.0 / (1.0 + jnp.exp(-y))).astype(sig_ref.dtype)


# ----------------------------------------------------------------------------
# Matmul wrapper (2-D output tiling + K reduction axis)
# ----------------------------------------------------------------------------
def matmul_fused(a, b_padded, *, n_out, tk, tn, activation,
                 out_dtype=jnp.bfloat16, dual_sigmoid=False):
    """a: (M, K) bf16 (unpadded); b_padded: (Kp, Np) bf16 (pre-padded)."""
    M, K = a.shape
    Kp, Np = b_padded.shape
    tm, Mp = _choose_m_tile(M)

    a_p = jnp.pad(a.astype(jnp.bfloat16), ((0, Mp - M), (0, Kp - K)))

    grid = (Mp // tm, Np // tn, Kp // tk)
    in_specs = [
        pl.BlockSpec((tm, tk), lambda i, j, k: (i, k)),
        pl.BlockSpec((tk, tn), lambda i, j, k: (k, j)),
    ]
    out_spec = pl.BlockSpec((tm, tn), lambda i, j, k: (i, j))
    cparams = pltpu.CompilerParams(
        dimension_semantics=("parallel", "parallel", "arbitrary")
    )
    scratch = [pltpu.VMEM((tm, tn), jnp.float32)]

    if dual_sigmoid:
        raw, sig = pl.pallas_call(
            _matmul_dual_sigmoid_kernel,
            out_shape=(
                jax.ShapeDtypeStruct((Mp, Np), jnp.float32),
                jax.ShapeDtypeStruct((Mp, Np), jnp.float32),
            ),
            grid_spec=pltpu.PrefetchScalarGridSpec(
                num_scalar_prefetch=0,
                grid=grid,
                in_specs=in_specs,
                out_specs=[out_spec, out_spec],
                scratch_shapes=scratch,
            ),
            compiler_params=cparams,
        )(a_p, b_padded)
        return raw[:M, :n_out], sig[:M, :n_out]

    out = pl.pallas_call(
        functools.partial(_matmul_act_kernel, activation=activation),
        out_shape=jax.ShapeDtypeStruct((Mp, Np), out_dtype),
        grid_spec=pltpu.PrefetchScalarGridSpec(
            num_scalar_prefetch=0,
            grid=grid,
            in_specs=in_specs,
            out_specs=out_spec,
            scratch_shapes=scratch,
        ),
        compiler_params=cparams,
    )(a_p, b_padded)
    return out[:M, :n_out]


# ----------------------------------------------------------------------------
# Conv layer wrapper (bf16 im2col glue + Pallas matmul hot path, NHWC)
# ----------------------------------------------------------------------------
def conv2d_im2col_nhwc(x_nhwc, layer, *, activation, dual_sigmoid=False):
    """Conv2d (no bias) matching torch.nn.Conv2d semantics, NHWC in/out."""
    N, H, W, Cin = x_nhwc.shape
    s = layer["stride"]
    KH = KW = 4
    pad = 1

    xp = jnp.pad(x_nhwc, ((0, 0), (pad, pad), (pad, pad), (0, 0)))
    Hp, Wp = H + 2 * pad, W + 2 * pad
    Ho = (Hp - KH) // s + 1
    Wo = (Wp - KW) // s + 1

    # im2col (bf16): last-dim flat index = (i*KW + j)*Cin + c
    cols = []
    for i in range(KH):
        for j in range(KW):
            cols.append(xp[:, i:i + s * Ho:s, j:j + s * Wo:s, :])
    patches = jnp.concatenate(cols, axis=-1)  # (N, Ho, Wo, KH*KW*Cin) bf16
    a = patches.reshape(N * Ho * Wo, KH * KW * Cin)

    result = matmul_fused(
        a, layer["b"],
        n_out=layer["cout"], tk=layer["tk"], tn=layer["tn"],
        activation=activation, out_dtype=jnp.bfloat16,
        dual_sigmoid=dual_sigmoid,
    )
    cout = layer["cout"]
    if dual_sigmoid:
        raw, sig = result
        return raw.reshape(N, Ho, Wo, cout), sig.reshape(N, Ho, Wo, cout)
    return result.reshape(N, Ho, Wo, cout)


# ----------------------------------------------------------------------------
# Parameter init (deterministic) with spectral normalization
# ----------------------------------------------------------------------------
def spectral_normalize(w_oihw, n_iter=30):
    cout = w_oihw.shape[0]
    wm = w_oihw.reshape(cout, -1).astype(jnp.float32)
    v = jnp.ones((wm.shape[1],), jnp.float32) / jnp.sqrt(float(wm.shape[1]))
    for _ in range(n_iter):
        u = wm @ v
        u = u / (jnp.linalg.norm(u) + 1e-12)
        v = wm.T @ u
        v = v / (jnp.linalg.norm(v) + 1e-12)
    sigma = u @ (wm @ v)
    return w_oihw / sigma


class DiscriminatorPallas:
    """JAX/Pallas port of Discriminator(in_channels, use_sigmoid=True,
    use_spectral_norm=True): 5 conv layers, k=4, strides 2/2/2/1/1, pad 1,
    no bias, LeakyReLU(0.2) after convs 1-4, sigmoid on the output."""

    def __init__(self, in_channels, use_sigmoid=True, key=None):
        self.use_sigmoid = use_sigmoid
        cfg = [
            (in_channels, 64, 2),
            (64, 128, 2),
            (128, 256, 2),
            (256, 512, 1),
            (512, 1, 1),
        ]
        keys = jax.random.split(key, len(cfg))
        self.layers = []
        for k, (ci, co, s) in zip(keys, cfg):
            w = 0.05 * jax.random.normal(k, (co, ci, 4, 4), jnp.float32)
            w = spectral_normalize(w)

            K = 4 * 4 * ci
            Kp = _round_up(K, 128)
            tk = _largest_divisor_tile(Kp, (512, 256, 128))
            Np = _round_up(co, 128)
            tn = _largest_divisor_tile(Np, (256, 128))

            # weight (Cout,Cin,KH,KW) -> (KH,KW,Cin,Cout) -> (K, Cout),
            # pre-padded to (Kp, Np) and cast to bf16 once at init.
            b = jnp.transpose(w, (2, 3, 1, 0)).reshape(K, co)
            b_p = jnp.pad(b, ((0, Kp - K), (0, Np - co))).astype(jnp.bfloat16)

            self.layers.append({
                "w": w,            # f32, kept for the reference check
                "b": b_p,          # (Kp, Np) bf16, pre-padded
                "stride": s,
                "cout": co,
                "tk": tk,
                "tn": tn,
            })

    def __call__(self, x_nchw):
        # NHWC + bf16 internally; transpose only at the model boundary.
        h = jnp.transpose(x_nchw, (0, 2, 3, 1)).astype(jnp.bfloat16)

        feats_nhwc = []
        for layer in self.layers[:4]:
            h = conv2d_im2col_nhwc(h, layer, activation="leaky_relu")
            feats_nhwc.append(h)

        last = self.layers[4]
        if self.use_sigmoid:
            raw, sig = conv2d_im2col_nhwc(
                h, last, activation="none", dual_sigmoid=True
            )
            feats_nhwc.append(raw)
            out_nhwc = sig
        else:
            raw = conv2d_im2col_nhwc(h, last, activation="none")
            feats_nhwc.append(raw)
            out_nhwc = raw

        feats = [
            jnp.transpose(f, (0, 3, 1, 2)).astype(jnp.float32)
            for f in feats_nhwc
        ]
        outputs = jnp.transpose(out_nhwc, (0, 3, 1, 2)).astype(jnp.float32)
        return outputs, feats


# ----------------------------------------------------------------------------
# Pure-JAX reference (mirrors the bf16-input / f32-accumulate numerics)
# ----------------------------------------------------------------------------
def _reference_forward(disc, x):
    h = x.astype(jnp.bfloat16)
    feats = []
    for idx, layer in enumerate(disc.layers):
        w = layer["w"].astype(jnp.bfloat16)
        y = jax.lax.conv_general_dilated(
            h, w,
            window_strides=(layer["stride"], layer["stride"]),
            padding=((1, 1), (1, 1)),
            dimension_numbers=("NCHW", "OIHW", "NCHW"),
            preferred_element_type=jnp.float32,
        )
        if idx < 4:
            y = jnp.where(y >= 0.0, y, 0.2 * y)
        feats.append(y)
        h = y.astype(jnp.bfloat16)
    out = jax.nn.sigmoid(feats[-1]) if disc.use_sigmoid else feats[-1]
    return out, feats


if __name__ == "__main__":
    key = jax.random.PRNGKey(0)
    k_param, k_x = jax.random.split(key)

    # small shapes: batch=2, in_channels=4, spatial=32 (32 is the smallest
    # power-of-two spatial size that keeps conv5's output non-empty).
    x = jax.random.normal(k_x, (2, 4, 32, 32), jnp.float32)

    disc = DiscriminatorPallas(in_channels=4, use_sigmoid=True, key=k_param)

    outputs, feats = disc(x)
    outputs = jax.block_until_ready(outputs)
    feats = [jax.block_until_ready(f) for f in feats]

    # sanity check against a pure-JAX reference (bf16 in / f32 accumulate,
    # so tolerances are bf16-appropriate).
    ref_out, ref_feats = _reference_forward(disc, x)
    assert outputs.shape == ref_out.shape
    assert jnp.allclose(outputs, ref_out, rtol=2e-2, atol=1e-2)
    for f, rf in zip(feats, ref_feats):
        assert f.shape == rf.shape
        assert jnp.allclose(f, rf, rtol=2e-2, atol=1e-2)

    print("KERNEL_OK")
</pallas_src>

<mosaic_0001>
module attributes {stable_mosaic.version = 11 : i64} {
  func.func @_matmul_act_kernel(%arg0: i32, %arg1: i32, %arg2: i32, %arg3: memref<512x128xbf16, #tpu.memory_space<vmem>>, %arg4: memref<128x128xbf16, #tpu.memory_space<vmem>>, %arg5: memref<512x128xbf16, #tpu.memory_space<vmem>>, %arg6: memref<512x128xf32, #tpu.memory_space<vmem>>) attributes {dimension_semantics = [#tpu.dimension_semantics<parallel>, #tpu.dimension_semantics<parallel>, #tpu.dimension_semantics<arbitrary>], iteration_bounds = array<i64: 1, 1, 1>, scalar_prefetch = 0 : i64, scratch_operands = 1 : i64, tpu.core_type = #tpu.core_type<tc>, window_params = [{transform_indices = @transform_0, window_bounds = array<i64: 512, 128>}, {transform_indices = @transform_1, window_bounds = array<i64: 128, 128>}, {transform_indices = @transform_2, window_bounds = array<i64: 512, 128>}]} {
    %c0_i32 = arith.constant 0 : i32
    %0 = arith.cmpi eq, %arg2, %c0_i32 : i32
    %1 = arith.extui %0 : i1 to i32
    %c0_i32_0 = arith.constant 0 : i32
    %2 = arith.cmpi ne, %1, %c0_i32_0 : i32
    scf.if %2 {
      %cst_10 = arith.constant 0.000000e+00 : f32
      %12 = vector.broadcast %cst_10 : f32 to vector<512x128xf32>
      %c0_11 = arith.constant 0 : index
      %c0_12 = arith.constant 0 : index
      %13 = vector.load %arg6[%c0_11, %c0_12] : memref<512x128xf32, #tpu.memory_space<vmem>>, vector<512x128xf32>
      tpu.vector_store %arg6[%c0_11, %c0_12], %12 {strides = array<i32>} : memref<512x128xf32, #tpu.memory_space<vmem>>, vector<512x128xf32>,
    } else {
    }
    %c0 = arith.constant 0 : index
    %c0_1 = arith.constant 0 : index
    %3 = vector.load %arg6[%c0, %c0_1] : memref<512x128xf32, #tpu.memory_space<vmem>>, vector<512x128xf32>
    %c0_2 = arith.constant 0 : index
    %c0_3 = arith.constant 0 : index
    %4 = vector.load %arg3[%c0_2, %c0_3] : memref<512x128xbf16, #tpu.memory_space<vmem>>, vector<512x128xbf16>
    %c0_4 = arith.constant 0 : index
    %c0_5 = arith.constant 0 : index
    %5 = vector.load %arg4[%c0_4, %c0_5] : memref<128x128xbf16, #tpu.memory_space<vmem>>, vector<128x128xbf16>
    %cst = arith.constant dense<0.000000e+00> : vector<512x128xf32>
    %6 = tpu.matmul %4, %5, %cst {dimension_numbers = #tpu.dot_dimension_numbers<[1], [0], [0], [1], [0, 0, 1, 1], [], []>} : vector<512x128xbf16>, vector<128x128xbf16>, vector<512x128xf32> -> vector<512x128xf32>
    %7 = arith.addf %3, %6 : vector<512x128xf32>
    %c0_6 = arith.constant 0 : index
    %c0_7 = arith.constant 0 : index
    %8 = vector.load %arg6[%c0_6, %c0_7] : memref<512x128xf32, #tpu.memory_space<vmem>>, vector<512x128xf32>
    tpu.vector_store %arg6[%c0_6, %c0_7], %7 {strides = array<i32>} : memref<512x128xf32, #tpu.memory_space<vmem>>, vector<512x128xf32>,
    %c0_i32_8 = arith.constant 0 : i32
    %9 = arith.cmpi eq, %arg2, %c0_i32_8 : i32
    %10 = arith.extui %9 : i1 to i32
    %c0_i32_9 = arith.constant 0 : i32
    %11 = arith.cmpi ne, %10, %c0_i32_9 : i32
    scf.if %11 {
      %c0_10 = arith.constant 0 : index
      %c0_11 = arith.constant 0 : index
      %12 = vector.load %arg6[%c0_10, %c0_11] : memref<512x128xf32, #tpu.memory_space<vmem>>, vector<512x128xf32>
      %cst_12 = arith.constant 0.000000e+00 : f32
      %13 = vector.broadcast %cst_12 : f32 to vector<512x128xf32>
      %14 = arith.cmpf oge, %12, %13 : vector<512x128xf32>
      %cst_13 = arith.constant 2.000000e-01 : f32
      %15 = vector.broadcast %cst_13 : f32 to vector<512x128xf32>
      %16 = arith.mulf %15, %12 : vector<512x128xf32>
      %17 = arith.select %14, %12, %16 : vector<512x128xi1>, vector<512x128xf32>
      %18 = arith.truncf %17 : vector<512x128xf32> to vector<512x128xbf16>
      %c0_14 = arith.constant 0 : index
      %c0_15 = arith.constant 0 : index
      %19 = vector.load %arg5[%c0_14, %c0_15] : memref<512x128xbf16, #tpu.memory_space<vmem>>, vector<512x128xbf16>
      tpu.vector_store %arg5[%c0_14, %c0_15], %18 {strides = array<i32>} : memref<512x128xbf16, #tpu.memory_space<vmem>>, vector<512x128xbf16>,
    } else {
    }
    return
  }
  func.func @transform_0(%arg0: i32, %arg1: i32, %arg2: i32) -> (i32, i32) {
    %c0_i32 = arith.constant 0 : i32
    return %arg0, %arg2 : i32, i32
  }
  func.func @transform_1(%arg0: i32, %arg1: i32, %arg2: i32) -> (i32, i32) {
    %c0_i32 = arith.constant 0 : i32
    return %arg2, %arg1 : i32, i32
  }
  func.func @transform_2(%arg0: i32, %arg1: i32, %arg2: i32) -> (i32, i32) {
    %c0_i32 = arith.constant 0 : i32
    return %arg0, %arg1 : i32, i32
  }
}

</mosaic_0001>

<bundles_post_ra>
// kernel: tpu_custom_call.1
= control target key start
LH: loop header
LB: loop body
LE: loop exit
PB: predicated region body
PF: predicated region fallthrough
CT: control target
= control target key end

     0   :  { %7 = vsyncpa [#allocation4], 0  ;;  %s1736_s0 = inlined_call_operand.hbm [shape: bf16[512,128], index: 0, kind: input, shape index: {}]   ;;  %s1737_s1 = inlined_call_operand.hbm [shape: bf16[128,128], index: 1, kind: input, shape index: {}]   ;;  %s1738_s2 = inlined_call_operand.hbm [shape: bf16[512,128], index: 2, kind: output, shape index: {}]  }
   0x1   :  { %8 = vsyncpa [#allocation7], 0 }
   0x2   :  { %9 = vsyncpa [#allocation5], 0  ;;  %s14_s11 = sshll.u32 %s1736_s0, 4  ;;  %s1698_s12 = smov [#allocation3]   ;;  %s15_s11 = int_to_ptr.hbm [resolvable:$true] %s14_s11 }
   0x3   :  { %s16_s13 = sshll.u32 %s1698_s12, 4  ;;  %s27_s16 = sshll.u32 %s1737_s1, 4  ;;  %s17_s13 = int_to_ptr.vmem [resolvable:$true] %s16_s13  ;;  %s28_s16 = int_to_ptr.hbm [resolvable:$true] %s27_s16 }
   0x4   :  { %s1699_s17 = smov 64   ;;  %s1700_s18 = smov 4  }
   0x5   :  { %22 = dma.hbm_to_vmem [thread:$0]  %s15_s11, 4096, %s17_s13, [#allocation4], %s1699_s17, %s1699_s17, %s1700_s18  }
   0x6   :  { %s1701_s19 = smov [#allocation6]  }
   0x7   :  { %s29_s20 = sshll.u32 %s1701_s19, 4  ;;  %s30_s20 = int_to_ptr.vmem [resolvable:$true] %s29_s20 }
   0x8   :  { %35 = dma.hbm_to_vmem [thread:$0]  %s28_s16, 1024, %s30_s20, [#allocation7], %s1699_s17, %s1699_s17, %s1700_s18  }
   0x9   :  { %1692 = dma.done.wait [#allocation4], 4096  }
   0xa   :  { %1693 = vsyncadd [#allocation4], 4294963200 }
   0xb   :  { %1694 = dma.done.wait [#allocation7], 1024  }
   0xc   :  { %1695 = vsyncadd [#allocation7], 4294966272  ;;  %v1399_v0 = vld [vmem:[#allocation6 + $0x38] sm:$0xff]  ;;  %v1398_v1 = vld [vmem:[#allocation6 + $0x30] sm:$0xff]  ;;  %s1702_s0 = smov [#allocation8]   ;;  %s1186_s23 = sshll.u32 %s1738_s2, 4  ;;  %s1187_s23 = int_to_ptr.hbm [resolvable:$true] %s1186_s23 }
   0xd   :  { %496 = vmatpush.bf16.msra.mxu0 %v1399_v0  ;;  %1591 = vmatpush.bf16.msra.mxu1 %v1399_v0  ;;  %v1397_v2 = vld [vmem:[#allocation6 + $0x28] sm:$0xff]  ;;  %v1396_v3 = vld [vmem:[#allocation6 + $0x20] sm:$0xff]  ;;  %v1395_v4 = vld [vmem:[#allocation6 + $0x18] sm:$0xff]  ;;  %s1184_s1 = sshll.u32 %s1702_s0, 4  ;;  %s1185_s1 = int_to_ptr.vmem [resolvable:$true] %s1184_s1 }
   0xe   :  { %1592 = vmatpush.bf16.msra.mxu2 %v1399_v0  ;;  %1593 = vmatpush.bf16.msra.mxu3 %v1399_v0  ;;  %v1394_v5 = vld [vmem:[#allocation6 + $0x10] sm:$0xff]  ;;  %v1393_v6 = vld [vmem:[#allocation6 + $0x8] sm:$0xff]  ;;  %v1392_v7 = vld [vmem:[#allocation6] sm:$0xff] }
   0xf   :  { %v1360_v8 = vld [vmem:[#allocation3] sm:$0xff]  ;;  %v1361_v12 = vld [vmem:[#allocation3 + $0x8] sm:$0xff]  ;;  %v1362_v16 = vld [vmem:[#allocation3 + $0x10] sm:$0xff] }
  0x10   :  { %v1368_v9 = vld [vmem:[#allocation3 + $0x40] sm:$0xff]  ;;  %v1369_v13 = vld [vmem:[#allocation3 + $0x48] sm:$0xff]  ;;  %v1370_v17 = vld [vmem:[#allocation3 + $0x50] sm:$0xff] }
  0x11   :  { %497 = vmatpush.bf16.msra.mxu0 %v1398_v1  ;;  %1594 = vmatpush.bf16.msra.mxu1 %v1398_v1  ;;  %v1376_v10 = vld [vmem:[#allocation3 + $0x80] sm:$0xff]  ;;  %v1377_v14 = vld [vmem:[#allocation3 + $0x88] sm:$0xff]  ;;  %v1378_v18 = vld [vmem:[#allocation3 + $0x90] sm:$0xff] }
  0x12   :  { %1595 = vmatpush.bf16.msra.mxu2 %v1398_v1  ;;  %1596 = vmatpush.bf16.msra.mxu3 %v1398_v1  ;;  %v1384_v11 = vld [vmem:[#allocation3 + $0xc0] sm:$0xff]  ;;  %v1385_v15 = vld [vmem:[#allocation3 + $0xc8] sm:$0xff]  ;;  %v1386_v19 = vld [vmem:[#allocation3 + $0xd0] sm:$0xff] }
  0x13   :  { %v1363_v20 = vld [vmem:[#allocation3 + $0x18] sm:$0xff]  ;;  %v1364_v24 = vld [vmem:[#allocation3 + $0x20] sm:$0xff]  ;;  %v1365_v28 = vld [vmem:[#allocation3 + $0x28] sm:$0xff] }
  0x14   :  { %v1371_v21 = vld [vmem:[#allocation3 + $0x58] sm:$0xff]  ;;  %v1372_v25 = vld [vmem:[#allocation3 + $0x60] sm:$0xff]  ;;  %v1373_v29 = vld [vmem:[#allocation3 + $0x68] sm:$0xff] }
  0x15   :  { %498 = vmatpush.bf16.msra.mxu0 %v1397_v2  ;;  %1597 = vmatpush.bf16.msra.mxu1 %v1397_v2  ;;  %v1379_v22 = vld [vmem:[#allocation3 + $0x98] sm:$0xff]  ;;  %v1380_v26 = vld [vmem:[#allocation3 + $0xa0] sm:$0xff]  ;;  %v1381_v30 = vld [vmem:[#allocation3 + $0xa8] sm:$0xff] }
  0x16   :  { %1598 = vmatpush.bf16.msra.mxu2 %v1397_v2  ;;  %1599 = vmatpush.bf16.msra.mxu3 %v1397_v2  ;;  %v1387_v23 = vld [vmem:[#allocation3 + $0xd8] sm:$0xff]  ;;  %v1388_v27 = vld [vmem:[#allocation3 + $0xe0] sm:$0xff]  ;;  %v1389_v31 = vld [vmem:[#allocation3 + $0xe8] sm:$0xff] }
  0x17   :  { %v1366_v32 = vld [vmem:[#allocation3 + $0x30] sm:$0xff]  ;;  %v1367_v36 = vld [vmem:[#allocation3 + $0x38] sm:$0xff] }
  0x18   :  { %v1374_v33 = vld [vmem:[#allocation3 + $0x70] sm:$0xff]  ;;  %v1375_v37 = vld [vmem:[#allocation3 + $0x78] sm:$0xff] }
  0x19   :  { %499 = vmatpush.bf16.msra.mxu0 %v1396_v3  ;;  %1600 = vmatpush.bf16.msra.mxu1 %v1396_v3  ;;  %v1382_v34 = vld [vmem:[#allocation3 + $0xb0] sm:$0xff]  ;;  %v1383_v38 = vld [vmem:[#allocation3 + $0xb8] sm:$0xff] }
  0x1a   :  { %1601 = vmatpush.bf16.msra.mxu2 %v1396_v3  ;;  %1602 = vmatpush.bf16.msra.mxu3 %v1396_v3  ;;  %v1390_v35 = vld [vmem:[#allocation3 + $0xf0] sm:$0xff]  ;;  %v1391_v39 = vld [vmem:[#allocation3 + $0xf8] sm:$0xff] }
  0x1d   :  { %500 = vmatpush.bf16.msra.mxu0 %v1395_v4  ;;  %1603 = vmatpush.bf16.msra.mxu1 %v1395_v4 }
  0x1e   :  { %1604 = vmatpush.bf16.msra.mxu2 %v1395_v4  ;;  %1605 = vmatpush.bf16.msra.mxu3 %v1395_v4 }
  0x21   :  { %501 = vmatpush.bf16.msra.mxu0 %v1394_v5  ;;  %1606 = vmatpush.bf16.msra.mxu1 %v1394_v5 }
  0x22   :  { %1607 = vmatpush.bf16.msra.mxu2 %v1394_v5  ;;  %1608 = vmatpush.bf16.msra.mxu3 %v1394_v5 }
  0x25   :  { %502 = vmatpush.bf16.msra.mxu0 %v1393_v6  ;;  %1609 = vmatpush.bf16.msra.mxu1 %v1393_v6 }
  0x26   :  { %1610 = vmatpush.bf16.msra.mxu2 %v1393_v6  ;;  %1611 = vmatpush.bf16.msra.mxu3 %v1393_v6 }
  0x29   :  { %503 = vmatpush.bf16.msra.mxu0 %v1392_v7  ;;  %1612 = vmatpush.bf16.msra.mxu1 %v1392_v7 }
  0x2a   :  { %1613 = vmatpush.bf16.msra.mxu2 %v1392_v7  ;;  %1614 = vmatpush.bf16.msra.mxu3 %v1392_v7 }
  0x2c   :  { %504 = vmatmul.bf16.vlgmr.msra.gmra.mxu0 %v1360_v8  ;;  %544 = vmatmul.bf16.vlgmr.msra.gmra.mxu1 %v1368_v9 }
  0x2d   :  { %584 = vmatmul.bf16.vlgmr.msra.gmra.mxu2 %v1376_v10  ;;  %624 = vmatmul.bf16.vlgmr.msra.gmra.mxu3 %v1384_v11 }
  0x3c   :  { %509 = vmatmul.bf16.gmra.mxu0 %v1361_v12  ;;  %549 = vmatmul.bf16.gmra.mxu1 %v1369_v13 }
  0x3d   :  { %589 = vmatmul.bf16.gmra.mxu2 %v1377_v14  ;;  %629 = vmatmul.bf16.gmra.mxu3 %v1385_v15 }
  0x4c   :  { %514 = vmatmul.bf16.gmra.mxu0 %v1362_v16  ;;  %554 = vmatmul.bf16.gmra.mxu1 %v1370_v17 }
  0x4d   :  { %594 = vmatmul.bf16.gmra.mxu2 %v1378_v18  ;;  %634 = vmatmul.bf16.gmra.mxu3 %v1386_v19 }
  0x5c   :  { %519 = vmatmul.bf16.gmra.mxu0 %v1363_v20  ;;  %559 = vmatmul.bf16.gmra.mxu1 %v1371_v21 }
  0x5d   :  { %599 = vmatmul.bf16.gmra.mxu2 %v1379_v22  ;;  %639 = vmatmul.bf16.gmra.mxu3 %v1387_v23 }
  0x6c   :  { %524 = vmatmul.bf16.gmra.mxu0 %v1364_v24  ;;  %564 = vmatmul.bf16.gmra.mxu1 %v1372_v25 }
  0x6d   :  { %604 = vmatmul.bf16.gmra.mxu2 %v1380_v26  ;;  %644 = vmatmul.bf16.gmra.mxu3 %v1388_v27 }
  0x7c   :  { %529 = vmatmul.bf16.gmra.mxu0 %v1365_v28  ;;  %569 = vmatmul.bf16.gmra.mxu1 %v1373_v29 }
  0x7d   :  { %609 = vmatmul.bf16.gmra.mxu2 %v1381_v30  ;;  %649 = vmatmul.bf16.gmra.mxu3 %v1389_v31 }
  0x8c   :  { %534 = vmatmul.bf16.gmra.mxu0 %v1366_v32  ;;  %574 = vmatmul.bf16.gmra.mxu1 %v1374_v33 }
  0x8d   :  { %614 = vmatmul.bf16.gmra.mxu2 %v1382_v34  ;;  %654 = vmatmul.bf16.gmra.mxu3 %v1390_v35 }
  0x9c   :  { %539 = vmatmul.bf16.gmra.mxu0 %v1367_v36  ;;  %579 = vmatmul.bf16.gmra.mxu1 %v1375_v37 }
  0x9d   :  { %619 = vmatmul.bf16.gmra.mxu2 %v1383_v38  ;;  %659 = vmatmul.bf16.gmra.mxu3 %v1391_v39 }
  0xa9   :  { %v505_v40 = vpop.f32.mrf.mxu0  ;;  %v545_v41 = vpop.f32.mrf.mxu1 }
  0xaa   :  { %v924_v42 = vmul.f32 0.2, %v505_v40  ;;  %v940_v43 = vmul.f32 0.2, %v545_v41  ;;  %vm860_vm0 = vcmp.ge.f32.partialorder %v505_v40, 0.0  ;;  %vm876_vm1 = vcmp.ge.f32.partialorder %v545_v41, 0.0 }
  0xac   :  { %v988_v50 = vsel %vm860_vm0, %v505_v40, %v924_v42  ;;  %v1004_v51 = vsel %vm876_vm1, %v545_v41, %v940_v43 }
  0xb0   :  { %v585_v44 = vpop.f32.mrf.mxu2  ;;  %v625_v45 = vpop.f32.mrf.mxu3 }
  0xb1   :  { %v507_v46 = vpop.f32.mrf.mxu0  ;;  %v547_v47 = vpop.f32.mrf.mxu1  ;;  %v956_v56 = vmul.f32 0.2, %v585_v44  ;;  %v972_v57 = vmul.f32 0.2, %v625_v45  ;;  %vm892_vm4 = vcmp.ge.f32.partialorder %v585_v44, 0.0  ;;  %vm908_vm5 = vcmp.ge.f32.partialorder %v625_v45, 0.0 }
  0xb2   :  { %vm861_vm2 = vcmp.ge.f32.partialorder %v507_v46, 0.0  ;;  %v925_v48 = vmul.f32 0.2, %v507_v46  ;;  %vm877_vm3 = vcmp.ge.f32.partialorder %v547_v47, 0.0  ;;  %v941_v49 = vmul.f32 0.2, %v547_v47 }
  0xb3   :  { %v1020_v0 = vsel %vm892_vm4, %v585_v44, %v956_v56  ;;  %v1036_v1 = vsel %vm908_vm5, %v625_v45, %v972_v57 }
  0xb4   :  { %v989_v52 = vsel %vm861_vm2, %v507_v46, %v925_v48  ;;  %v1005_v53 = vsel %vm877_vm3, %v547_v47, %v941_v49 }
  0xb5   :  { %v1403_v54 = vpack.c.bf16 %v989_v52, %v988_v50  ;;  %v1443_v55 = vpack.c.bf16 %v1005_v53, %v1004_v51 }
  0xb7   :  { %1404 = vst [vmem:[#allocation8] sm:$0xff] %v1403_v54  }
  0xb8   :  { %1567 = vst [vmem:[#allocation8 + $0x40] sm:$0xff] %v1443_v55   ;;  %v587_v58 = vpop.f32.mrf.mxu2  ;;  %v627_v59 = vpop.f32.mrf.mxu3 }
  0xb9   :  { %vm893_vm6 = vcmp.ge.f32.partialorder %v587_v58, 0.0  ;;  %v957_v60 = vmul.f32 0.2, %v587_v58  ;;  %vm909_vm7 = vcmp.ge.f32.partialorder %v627_v59, 0.0  ;;  %v973_v61 = vmul.f32 0.2, %v627_v59  ;;  %v510_v62 = vpop.f32.mrf.mxu0  ;;  %v550_v63 = vpop.f32.mrf.mxu1 }
  0xba   :  { %v926_v6 = vmul.f32 0.2, %v510_v62  ;;  %v942_v7 = vmul.f32 0.2, %v550_v63  ;;  %vm862_vm8 = vcmp.ge.f32.partialorder %v510_v62, 0.0  ;;  %vm878_vm9 = vcmp.ge.f32.partialorder %v550_v63, 0.0 }
  0xbb   :  { %v1021_v2 = vsel %vm893_vm6, %v587_v58, %v957_v60  ;;  %v1037_v3 = vsel %vm909_vm7, %v627_v59, %v973_v61 }
  0xbc   :  { %v1483_v4 = vpack.c.bf16 %v1021_v2, %v1020_v0  ;;  %v1523_v5 = vpack.c.bf16 %v1037_v3, %v1036_v1  ;;  %v990_v14 = vsel %vm862_vm8, %v510_v62, %v926_v6  ;;  %v1006_v15 = vsel %vm878_vm9, %v550_v63, %v942_v7 }
  0xbe   :  { %1575 = vst [vmem:[#allocation8 + $0x80] sm:$0xff] %v1483_v4  }
  0xbf   :  { %1583 = vst [vmem:[#allocation8 + $0xc0] sm:$0xff] %v1523_v5  }
  0xc0   :  { %v590_v8 = vpop.f32.mrf.mxu2  ;;  %v630_v9 = vpop.f32.mrf.mxu3 }
  0xc1   :  { %v512_v10 = vpop.f32.mrf.mxu0  ;;  %v552_v11 = vpop.f32.mrf.mxu1  ;;  %v958_v20 = vmul.f32 0.2, %v590_v8  ;;  %v974_v21 = vmul.f32 0.2, %v630_v9  ;;  %vm894_vm12 = vcmp.ge.f32.partialorder %v590_v8, 0.0  ;;  %vm910_vm13 = vcmp.ge.f32.partialorder %v630_v9, 0.0 }
  0xc2   :  { %vm863_vm10 = vcmp.ge.f32.partialorder %v512_v10, 0.0  ;;  %v927_v12 = vmul.f32 0.2, %v512_v10  ;;  %vm879_vm11 = vcmp.ge.f32.partialorder %v552_v11, 0.0  ;;  %v943_v13 = vmul.f32 0.2, %v552_v11 }
  0xc3   :  { %v1022_v28 = vsel %vm894_vm12, %v590_v8, %v958_v20  ;;  %v1038_v29 = vsel %vm910_vm13, %v630_v9, %v974_v21 }
  0xc4   :  { %v991_v16 = vsel %vm863_vm10, %v512_v10, %v927_v12  ;;  %v1007_v17 = vsel %vm879_vm11, %v552_v11, %v943_v13 }
  0xc5   :  { %v1408_v18 = vpack.c.bf16 %v991_v16, %v990_v14  ;;  %v1448_v19 = vpack.c.bf16 %v1007_v17, %v1006_v15 }
  0xc7   :  { %1560 = vst [vmem:[#allocation8 + $0x8] sm:$0xff] %v1408_v18  }
  0xc8   :  { %1568 = vst [vmem:[#allocation8 + $0x48] sm:$0xff] %v1448_v19   ;;  %v592_v22 = vpop.f32.mrf.mxu2  ;;  %v632_v23 = vpop.f32.mrf.mxu3 }
  0xc9   :  { %vm895_vm14 = vcmp.ge.f32.partialorder %v592_v22, 0.0  ;;  %v959_v24 = vmul.f32 0.2, %v592_v22  ;;  %vm911_vm15 = vcmp.ge.f32.partialorder %v632_v23, 0.0  ;;  %v975_v25 = vmul.f32 0.2, %v632_v23  ;;  %v515_v26 = vpop.f32.mrf.mxu0  ;;  %v555_v27 = vpop.f32.mrf.mxu1 }
  0xca   :  { %v928_v34 = vmul.f32 0.2, %v515_v26  ;;  %v944_v35 = vmul.f32 0.2, %v555_v27  ;;  %vm864_vm0 = vcmp.ge.f32.partialorder %v515_v26, 0.0  ;;  %vm880_vm1 = vcmp.ge.f32.partialorder %v555_v27, 0.0 }
  0xcb   :  { %v1023_v30 = vsel %vm895_vm14, %v592_v22, %v959_v24  ;;  %v1039_v31 = vsel %vm911_vm15, %v632_v23, %v975_v25 }
  0xcc   :  { %v1488_v32 = vpack.c.bf16 %v1023_v30, %v1022_v28  ;;  %v1528_v33 = vpack.c.bf16 %v1039_v31, %v1038_v29  ;;  %v992_v42 = vsel %vm864_vm0, %v515_v26, %v928_v34  ;;  %v1008_v43 = vsel %vm880_vm1, %v555_v27, %v944_v35 }
  0xce   :  { %1576 = vst [vmem:[#allocation8 + $0x88] sm:$0xff] %v1488_v32  }
  0xcf   :  { %1584 = vst [vmem:[#allocation8 + $0xc8] sm:$0xff] %v1528_v33  }
  0xd0   :  { %v595_v36 = vpop.f32.mrf.mxu2  ;;  %v635_v37 = vpop.f32.mrf.mxu3 }
  0xd1   :  { %v517_v38 = vpop.f32.mrf.mxu0  ;;  %v557_v39 = vpop.f32.mrf.mxu1  ;;  %v960_v48 = vmul.f32 0.2, %v595_v36  ;;  %v976_v49 = vmul.f32 0.2, %v635_v37  ;;  %vm896_vm4 = vcmp.ge.f32.partialorder %v595_v36, 0.0  ;;  %vm912_vm5 = vcmp.ge.f32.partialorder %v635_v37, 0.0 }
  0xd2   :  { %vm865_vm2 = vcmp.ge.f32.partialorder %v517_v38, 0.0  ;;  %v929_v40 = vmul.f32 0.2, %v517_v38  ;;  %vm881_vm3 = vcmp.ge.f32.partialorder %v557_v39, 0.0  ;;  %v945_v41 = vmul.f32 0.2, %v557_v39 }
  0xd3   :  { %v1024_v56 = vsel %vm896_vm4, %v595_v36, %v960_v48  ;;  %v1040_v57 = vsel %vm912_vm5, %v635_v37, %v976_v49 }
  0xd4   :  { %v993_v44 = vsel %vm865_vm2, %v517_v38, %v929_v40  ;;  %v1009_v45 = vsel %vm881_vm3, %v557_v39, %v945_v41 }
  0xd5   :  { %v1413_v46 = vpack.c.bf16 %v993_v44, %v992_v42  ;;  %v1453_v47 = vpack.c.bf16 %v1009_v45, %v1008_v43 }
  0xd7   :  { %1561 = vst [vmem:[#allocation8 + $0x10] sm:$0xff] %v1413_v46  }
  0xd8   :  { %1569 = vst [vmem:[#allocation8 + $0x50] sm:$0xff] %v1453_v47   ;;  %v597_v50 = vpop.f32.mrf.mxu2  ;;  %v637_v51 = vpop.f32.mrf.mxu3 }
  0xd9   :  { %vm897_vm6 = vcmp.ge.f32.partialorder %v597_v50, 0.0  ;;  %v961_v52 = vmul.f32 0.2, %v597_v50  ;;  %vm913_vm7 = vcmp.ge.f32.partialorder %v637_v51, 0.0  ;;  %v977_v53 = vmul.f32 0.2, %v637_v51  ;;  %v520_v54 = vpop.f32.mrf.mxu0  ;;  %v560_v55 = vpop.f32.mrf.mxu1 }
  0xda   :  { %v930_v62 = vmul.f32 0.2, %v520_v54  ;;  %v946_v63 = vmul.f32 0.2, %v560_v55  ;;  %vm866_vm8 = vcmp.ge.f32.partialorder %v520_v54, 0.0  ;;  %vm882_vm9 = vcmp.ge.f32.partialorder %v560_v55, 0.0 }
  0xdb   :  { %v1025_v58 = vsel %vm897_vm6, %v597_v50, %v961_v52  ;;  %v1041_v59 = vsel %vm913_vm7, %v637_v51, %v977_v53 }
  0xdc   :  { %v1493_v60 = vpack.c.bf16 %v1025_v58, %v1024_v56  ;;  %v1533_v61 = vpack.c.bf16 %v1041_v59, %v1040_v57  ;;  %v994_v6 = vsel %vm866_vm8, %v520_v54, %v930_v62  ;;  %v1010_v7 = vsel %vm882_vm9, %v560_v55, %v946_v63 }
  0xde   :  { %1577 = vst [vmem:[#allocation8 + $0x90] sm:$0xff] %v1493_v60  }
  0xdf   :  { %1585 = vst [vmem:[#allocation8 + $0xd0] sm:$0xff] %v1533_v61  }
  0xe0   :  { %v600_v0 = vpop.f32.mrf.mxu2  ;;  %v640_v1 = vpop.f32.mrf.mxu3 }
  0xe1   :  { %v522_v2 = vpop.f32.mrf.mxu0  ;;  %v562_v3 = vpop.f32.mrf.mxu1  ;;  %v962_v12 = vmul.f32 0.2, %v600_v0  ;;  %v978_v13 = vmul.f32 0.2, %v640_v1  ;;  %vm898_vm12 = vcmp.ge.f32.partialorder %v600_v0, 0.0  ;;  %vm914_vm13 = vcmp.ge.f32.partialorder %v640_v1, 0.0 }
  0xe2   :  { %vm867_vm10 = vcmp.ge.f32.partialorder %v522_v2, 0.0  ;;  %v931_v4 = vmul.f32 0.2, %v522_v2  ;;  %vm883_vm11 = vcmp.ge.f32.partialorder %v562_v3, 0.0  ;;  %v947_v5 = vmul.f32 0.2, %v562_v3 }
  0xe3   :  { %v1026_v20 = vsel %vm898_vm12, %v600_v0, %v962_v12  ;;  %v1042_v21 = vsel %vm914_vm13, %v640_v1, %v978_v13 }
  0xe4   :  { %v995_v8 = vsel %vm867_vm10, %v522_v2, %v931_v4  ;;  %v1011_v9 = vsel %vm883_vm11, %v562_v3, %v947_v5 }
  0xe5   :  { %v1418_v10 = vpack.c.bf16 %v995_v8, %v994_v6  ;;  %v1458_v11 = vpack.c.bf16 %v1011_v9, %v1010_v7 }
  0xe7   :  { %1562 = vst [vmem:[#allocation8 + $0x18] sm:$0xff] %v1418_v10  }
  0xe8   :  { %1570 = vst [vmem:[#allocation8 + $0x58] sm:$0xff] %v1458_v11   ;;  %v602_v14 = vpop.f32.mrf.mxu2  ;;  %v642_v15 = vpop.f32.mrf.mxu3 }
  0xe9   :  { %vm899_vm14 = vcmp.ge.f32.partialorder %v602_v14, 0.0  ;;  %v963_v16 = vmul.f32 0.2, %v602_v14  ;;  %vm915_vm15 = vcmp.ge.f32.partialorder %v642_v15, 0.0  ;;  %v979_v17 = vmul.f32 0.2, %v642_v15  ;;  %v525_v18 = vpop.f32.mrf.mxu0  ;;  %v565_v19 = vpop.f32.mrf.mxu1 }
  0xea   :  { %v932_v26 = vmul.f32 0.2, %v525_v18  ;;  %v948_v27 = vmul.f32 0.2, %v565_v19  ;;  %vm868_vm0 = vcmp.ge.f32.partialorder %v525_v18, 0.0  ;;  %vm884_vm1 = vcmp.ge.f32.partialorder %v565_v19, 0.0 }
  0xeb   :  { %v1027_v22 = vsel %vm899_vm14, %v602_v14, %v963_v16  ;;  %v1043_v23 = vsel %vm915_vm15, %v642_v15, %v979_v17 }
  0xec   :  { %v1498_v24 = vpack.c.bf16 %v1027_v22, %v1026_v20  ;;  %v1538_v25 = vpack.c.bf16 %v1043_v23, %v1042_v21  ;;  %v996_v34 = vsel %vm868_vm0, %v525_v18, %v932_v26  ;;  %v1012_v35 = vsel %vm884_vm1, %v565_v19, %v948_v27 }
  0xee   :  { %1578 = vst [vmem:[#allocation8 + $0x98] sm:$0xff] %v1498_v24  }
  0xef   :  { %1586 = vst [vmem:[#allocation8 + $0xd8] sm:$0xff] %v1538_v25  }
  0xf0   :  { %v605_v28 = vpop.f32.mrf.mxu2  ;;  %v645_v29 = vpop.f32.mrf.mxu3 }
  0xf1   :  { %v527_v30 = vpop.f32.mrf.mxu0  ;;  %v567_v31 = vpop.f32.mrf.mxu1  ;;  %v964_v40 = vmul.f32 0.2, %v605_v28  ;;  %v980_v41 = vmul.f32 0.2, %v645_v29  ;;  %vm900_vm4 = vcmp.ge.f32.partialorder %v605_v28, 0.0  ;;  %vm916_vm5 = vcmp.ge.f32.partialorder %v645_v29, 0.0 }
  0xf2   :  { %vm869_vm2 = vcmp.ge.f32.partialorder %v527_v30, 0.0  ;;  %v933_v32 = vmul.f32 0.2, %v527_v30  ;;  %vm885_vm3 = vcmp.ge.f32.partialorder %v567_v31, 0.0  ;;  %v949_v33 = vmul.f32 0.2, %v567_v31 }
  0xf3   :  { %v1028_v48 = vsel %vm900_vm4, %v605_v28, %v964_v40  ;;  %v1044_v49 = vsel %vm916_vm5, %v645_v29, %v980_v41 }
  0xf4   :  { %v997_v36 = vsel %vm869_vm2, %v527_v30, %v933_v32  ;;  %v1013_v37 = vsel %vm885_vm3, %v567_v31, %v949_v33 }
  0xf5   :  { %v1423_v38 = vpack.c.bf16 %v997_v36, %v996_v34  ;;  %v1463_v39 = vpack.c.bf16 %v1013_v37, %v1012_v35 }
  0xf7   :  { %1563 = vst [vmem:[#allocation8 + $0x20] sm:$0xff] %v1423_v38  }
  0xf8   :  { %1571 = vst [vmem:[#allocation8 + $0x60] sm:$0xff] %v1463_v39   ;;  %v607_v42 = vpop.f32.mrf.mxu2  ;;  %v647_v43 = vpop.f32.mrf.mxu3 }
  0xf9   :  { %vm901_vm6 = vcmp.ge.f32.partialorder %v607_v42, 0.0  ;;  %v965_v44 = vmul.f32 0.2, %v607_v42  ;;  %vm917_vm7 = vcmp.ge.f32.partialorder %v647_v43, 0.0  ;;  %v981_v45 = vmul.f32 0.2, %v647_v43  ;;  %v530_v46 = vpop.f32.mrf.mxu0  ;;  %v570_v47 = vpop.f32.mrf.mxu1 }
  0xfa   :  { %v934_v54 = vmul.f32 0.2, %v530_v46  ;;  %v950_v55 = vmul.f32 0.2, %v570_v47  ;;  %vm870_vm8 = vcmp.ge.f32.partialorder %v530_v46, 0.0  ;;  %vm886_vm9 = vcmp.ge.f32.partialorder %v570_v47, 0.0 }
  0xfb   :  { %v1029_v50 = vsel %vm901_vm6, %v607_v42, %v965_v44  ;;  %v1045_v51 = vsel %vm917_vm7, %v647_v43, %v981_v45 }
  0xfc   :  { %v1503_v52 = vpack.c.bf16 %v1029_v50, %v1028_v48  ;;  %v1543_v53 = vpack.c.bf16 %v1045_v51, %v1044_v49  ;;  %v998_v62 = vsel %vm870_vm8, %v530_v46, %v934_v54  ;;  %v1014_v63 = vsel %vm886_vm9, %v570_v47, %v950_v55 }
  0xfe   :  { %1579 = vst [vmem:[#allocation8 + $0xa0] sm:$0xff] %v1503_v52  }
  0xff   :  { %1587 = vst [vmem:[#allocation8 + $0xe0] sm:$0xff] %v1543_v53  }
 0x100   :  { %v610_v56 = vpop.f32.mrf.mxu2  ;;  %v650_v57 = vpop.f32.mrf.mxu3 }
 0x101   :  { %v532_v58 = vpop.f32.mrf.mxu0  ;;  %v572_v59 = vpop.f32.mrf.mxu1  ;;  %v966_v4 = vmul.f32 0.2, %v610_v56  ;;  %v982_v5 = vmul.f32 0.2, %v650_v57  ;;  %vm902_vm12 = vcmp.ge.f32.partialorder %v610_v56, 0.0  ;;  %vm918_vm13 = vcmp.ge.f32.partialorder %v650_v57, 0.0 }
 0x102   :  { %vm871_vm10 = vcmp.ge.f32.partialorder %v532_v58, 0.0  ;;  %v935_v60 = vmul.f32 0.2, %v532_v58  ;;  %vm887_vm11 = vcmp.ge.f32.partialorder %v572_v59, 0.0  ;;  %v951_v61 = vmul.f32 0.2, %v572_v59 }
 0x103   :  { %v1030_v12 = vsel %vm902_vm12, %v610_v56, %v966_v4  ;;  %v1046_v13 = vsel %vm918_vm13, %v650_v57, %v982_v5 }
 0x104   :  { %v999_v0 = vsel %vm871_vm10, %v532_v58, %v935_v60  ;;  %v1015_v1 = vsel %vm887_vm11, %v572_v59, %v951_v61 }
 0x105   :  { %v1428_v2 = vpack.c.bf16 %v999_v0, %v998_v62  ;;  %v1468_v3 = vpack.c.bf16 %v1015_v1, %v1014_v63 }
 0x107   :  { %1564 = vst [vmem:[#allocation8 + $0x28] sm:$0xff] %v1428_v2  }
 0x108   :  { %1572 = vst [vmem:[#allocation8 + $0x68] sm:$0xff] %v1468_v3   ;;  %v612_v6 = vpop.f32.mrf.mxu2  ;;  %v652_v7 = vpop.f32.mrf.mxu3 }
 0x109   :  { %vm903_vm14 = vcmp.ge.f32.partialorder %v612_v6, 0.0  ;;  %v967_v8 = vmul.f32 0.2, %v612_v6  ;;  %vm919_vm15 = vcmp.ge.f32.partialorder %v652_v7, 0.0  ;;  %v983_v9 = vmul.f32 0.2, %v652_v7  ;;  %v535_v10 = vpop.f32.mrf.mxu0  ;;  %v575_v11 = vpop.f32.mrf.mxu1 }
 0x10a   :  { %v936_v18 = vmul.f32 0.2, %v535_v10  ;;  %v952_v19 = vmul.f32 0.2, %v575_v11  ;;  %vm872_vm0 = vcmp.ge.f32.partialorder %v535_v10, 0.0  ;;  %vm888_vm1 = vcmp.ge.f32.partialorder %v575_v11, 0.0 }
 0x10b   :  { %v1031_v14 = vsel %vm903_vm14, %v612_v6, %v967_v8  ;;  %v1047_v15 = vsel %vm919_vm15, %v652_v7, %v983_v9 }
 0x10c   :  { %v1508_v16 = vpack.c.bf16 %v1031_v14, %v1030_v12  ;;  %v1548_v17 = vpack.c.bf16 %v1047_v15, %v1046_v13  ;;  %v1000_v26 = vsel %vm872_vm0, %v535_v10, %v936_v18  ;;  %v1016_v27 = vsel %vm888_vm1, %v575_v11, %v952_v19 }
 0x10e   :  { %1580 = vst [vmem:[#allocation8 + $0xa8] sm:$0xff] %v1508_v16  }
 0x10f   :  { %1588 = vst [vmem:[#allocation8 + $0xe8] sm:$0xff] %v1548_v17  }
 0x110   :  { %v615_v20 = vpop.f32.mrf.mxu2  ;;  %v655_v21 = vpop.f32.mrf.mxu3 }
 0x111   :  { %v537_v22 = vpop.f32.mrf.mxu0  ;;  %v577_v23 = vpop.f32.mrf.mxu1  ;;  %v968_v32 = vmul.f32 0.2, %v615_v20  ;;  %v984_v33 = vmul.f32 0.2, %v655_v21  ;;  %vm904_vm4 = vcmp.ge.f32.partialorder %v615_v20, 0.0  ;;  %vm920_vm5 = vcmp.ge.f32.partialorder %v655_v21, 0.0 }
 0x112   :  { %vm873_vm2 = vcmp.ge.f32.partialorder %v537_v22, 0.0  ;;  %v937_v24 = vmul.f32 0.2, %v537_v22  ;;  %vm889_vm3 = vcmp.ge.f32.partialorder %v577_v23, 0.0  ;;  %v953_v25 = vmul.f32 0.2, %v577_v23 }
 0x113   :  { %v1032_v40 = vsel %vm904_vm4, %v615_v20, %v968_v32  ;;  %v1048_v41 = vsel %vm920_vm5, %v655_v21, %v984_v33 }
 0x114   :  { %v1001_v28 = vsel %vm873_vm2, %v537_v22, %v937_v24  ;;  %v1017_v29 = vsel %vm889_vm3, %v577_v23, %v953_v25 }
 0x115   :  { %v1433_v30 = vpack.c.bf16 %v1001_v28, %v1000_v26  ;;  %v1473_v31 = vpack.c.bf16 %v1017_v29, %v1016_v27 }
 0x117   :  { %1565 = vst [vmem:[#allocation8 + $0x30] sm:$0xff] %v1433_v30  }
 0x118   :  { %1573 = vst [vmem:[#allocation8 + $0x70] sm:$0xff] %v1473_v31   ;;  %v617_v34 = vpop.f32.mrf.mxu2  ;;  %v657_v35 = vpop.f32.mrf.mxu3 }
 0x119   :  { %vm905_vm6 = vcmp.ge.f32.partialorder %v617_v34, 0.0  ;;  %v969_v36 = vmul.f32 0.2, %v617_v34  ;;  %vm921_vm7 = vcmp.ge.f32.partialorder %v657_v35, 0.0  ;;  %v985_v37 = vmul.f32 0.2, %v657_v35  ;;  %v540_v38 = vpop.f32.mrf.mxu0  ;;  %v580_v39 = vpop.f32.mrf.mxu1 }
 0x11a   :  { %v938_v46 = vmul.f32 0.2, %v540_v38  ;;  %v954_v47 = vmul.f32 0.2, %v580_v39  ;;  %vm874_vm8 = vcmp.ge.f32.partialorder %v540_v38, 0.0  ;;  %vm890_vm9 = vcmp.ge.f32.partialorder %v580_v39, 0.0 }
 0x11b   :  { %v1033_v42 = vsel %vm905_vm6, %v617_v34, %v969_v36  ;;  %v1049_v43 = vsel %vm921_vm7, %v657_v35, %v985_v37 }
 0x11c   :  { %v1513_v44 = vpack.c.bf16 %v1033_v42, %v1032_v40  ;;  %v1553_v45 = vpack.c.bf16 %v1049_v43, %v1048_v41  ;;  %v1002_v54 = vsel %vm874_vm8, %v540_v38, %v938_v46  ;;  %v1018_v55 = vsel %vm890_vm9, %v580_v39, %v954_v47 }
 0x11e   :  { %1581 = vst [vmem:[#allocation8 + $0xb0] sm:$0xff] %v1513_v44  }
 0x11f   :  { %1589 = vst [vmem:[#allocation8 + $0xf0] sm:$0xff] %v1553_v45  }
 0x120   :  { %v620_v48 = vpop.f32.mrf.mxu2  ;;  %v660_v49 = vpop.f32.mrf.mxu3 }
 0x121   :  { %v542_v50 = vpop.f32.mrf.mxu0  ;;  %v582_v51 = vpop.f32.mrf.mxu1  ;;  %v970_v60 = vmul.f32 0.2, %v620_v48  ;;  %v986_v61 = vmul.f32 0.2, %v660_v49  ;;  %vm906_vm12 = vcmp.ge.f32.partialorder %v620_v48, 0.0  ;;  %vm922_vm13 = vcmp.ge.f32.partialorder %v660_v49, 0.0 }
 0x122   :  { %vm875_vm10 = vcmp.ge.f32.partialorder %v542_v50, 0.0  ;;  %v939_v52 = vmul.f32 0.2, %v542_v50  ;;  %vm891_vm11 = vcmp.ge.f32.partialorder %v582_v51, 0.0  ;;  %v955_v53 = vmul.f32 0.2, %v582_v51 }
 0x123   :  { %v1034_v2 = vsel %vm906_vm12, %v620_v48, %v970_v60  ;;  %v1050_v3 = vsel %vm922_vm13, %v660_v49, %v986_v61 }
 0x124   :  { %v1003_v56 = vsel %vm875_vm10, %v542_v50, %v939_v52  ;;  %v1019_v57 = vsel %vm891_vm11, %v582_v51, %v955_v53 }
 0x125   :  { %v1438_v58 = vpack.c.bf16 %v1003_v56, %v1002_v54  ;;  %v1478_v59 = vpack.c.bf16 %v1019_v57, %v1018_v55 }
 0x127   :  { %1566 = vst [vmem:[#allocation8 + $0x38] sm:$0xff] %v1438_v58  }
 0x128   :  { %1574 = vst [vmem:[#allocation8 + $0x78] sm:$0xff] %v1478_v59   ;;  %v622_v62 = vpop.f32.mrf.mxu2  ;;  %v662_v63 = vpop.f32.mrf.mxu3 }
 0x129   :  { %vm907_vm14 = vcmp.ge.f32.partialorder %v622_v62, 0.0  ;;  %v971_v0 = vmul.f32 0.2, %v622_v62  ;;  %vm923_vm15 = vcmp.ge.f32.partialorder %v662_v63, 0.0  ;;  %v987_v1 = vmul.f32 0.2, %v662_v63 }
 0x12b   :  { %v1035_v4 = vsel %vm907_vm14, %v622_v62, %v971_v0  ;;  %v1051_v5 = vsel %vm923_vm15, %v662_v63, %v987_v1 }
 0x12c   :  { %v1518_v6 = vpack.c.bf16 %v1035_v4, %v1034_v2  ;;  %v1558_v7 = vpack.c.bf16 %v1051_v5, %v1050_v3 }
 0x12e   :  { %1582 = vst [vmem:[#allocation8 + $0xb8] sm:$0xff] %v1518_v6  }
 0x12f   :  { %1590 = vst [vmem:[#allocation8 + $0xf8] sm:$0xff] %v1558_v7  }
 0x130   :  { %1192 = dma.vmem_to_hbm [thread:$0]  %s1185_s1, 4096, %s1187_s23, [#allocation5], %s1699_s17, %s1699_s17, %s1700_s18  }
 0x131   :  { %1696 = dma.done.wait [#allocation5], 4096  }
 0x132   :  { %1697 = vsyncadd [#allocation5], 4294963200 }
 0x133   :  { %1197 = vsyncpa [#allocation4], 1 }
 0x134   :  { %1198 = vsyncpa [#allocation7], 1 }
 0x135   :  { %1199 = vsyncpa [#allocation5], 1 }

</bundles_post_ra>
